<compile_context>
chip_gen: v7x
topology: tpu7x:2x2x1
jax: 0.10.0
libtpu: 0.0.40
codegen_flags: <defaults>
</compile_context>

<pallas_src>
import functools
import numpy as np
import jax
import jax.numpy as jnp
from jax import lax
from jax.experimental import pallas as pl
from jax.experimental.pallas import tpu as pltpu


# ------------------------------ helpers ------------------------------------ #

def _row_tile(m, target=512):
    """Largest divisor of m that is <= target (preferring multiples of 8)."""
    if m <= target:
        return m
    best = None
    for t in range(min(target, m), 0, -1):
        if m % t == 0:
            if t % 8 == 0:
                return t
            if best is None:
                best = t
    return best or m


# ----------------------------- Pallas kernels ------------------------------ #

def _linear_kernel(x_ref, w_ref, b_ref, o_ref):
    # y = x @ W_t + b  (W_t already (in_features, out_features): no in-kernel transpose)
    # NOTE: operands could be cast to bf16 here for v6e/v7x MXU peak if lower
    # precision is acceptable; kept f32 to match the PyTorch module exactly.
    o_ref[...] = (
        jnp.dot(x_ref[...], w_ref[...], preferred_element_type=jnp.float32)
        + b_ref[...]
    )


def linear_tiled(x2d, w_t, b):
    """Row-tiled, pipelined y = x @ W_t + b. x2d: (M, K), w_t: (K, N), b: (N,)."""
    M, K = x2d.shape
    N = w_t.shape[1]
    tm = _row_tile(M)
    return pl.pallas_call(
        _linear_kernel,
        grid=(M // tm,),
        in_specs=[
            pl.BlockSpec((tm, K), lambda i: (i, 0)),
            pl.BlockSpec((K, N), lambda i: (0, 0)),   # weight stays resident
            pl.BlockSpec((1, N), lambda i: (0, 0)),
        ],
        out_specs=pl.BlockSpec((tm, N), lambda i: (i, 0)),
        out_shape=jax.ShapeDtypeStruct((M, N), jnp.float32),
        compiler_params=pltpu.CompilerParams(dimension_semantics=("parallel",)),
    )(x2d, w_t, b.reshape(1, N))


def _complex_attn_kernel(q_ref, k_ref, v_ref, m_ref, o_ref, attn_ref, *,
                         n_head, d_k, d_v, inv_temperature):
    # Block shapes:
    #   q_ref: (2, 1, Lq, n_head*d_k)   [0]=real, [1]=phase
    #   k_ref: (2, 1, Lk, n_head*d_k)
    #   v_ref: (2, 1, Lk, n_head*d_v)
    #   m_ref: (1, Lq, Lk) int8
    #   o_ref: (2, 1, Lq, n_head*d_v)
    #   attn_ref: (n_head, 1, Lq, Lk)
    mask = m_ref[0] > 0
    neg = jnp.float32(-1e30)

    qr_all = q_ref[0, 0]
    qp_all = q_ref[1, 0]
    kr_all = k_ref[0, 0]
    kp_all = k_ref[1, 0]
    vr_all = v_ref[0, 0]
    vp_all = v_ref[1, 0]

    # contract last axes of both operands: (Lq, d) . (Lk, d) -> (Lq, Lk), no transpose
    dn = (((1,), (1,)), ((), ()))

    def softmax(a):
        m = jnp.max(a, axis=-1, keepdims=True)
        e = jnp.exp(a - m)
        return e * pl.reciprocal(jnp.sum(e, axis=-1, keepdims=True), approx=True)

    for h in range(n_head):  # static unroll over heads (all heads per grid step)
        ks = slice(h * d_k, (h + 1) * d_k)
        vs = slice(h * d_v, (h + 1) * d_v)

        qr = qr_all[:, ks] * inv_temperature   # fold 1/temperature into Q
        qp = qp_all[:, ks] * inv_temperature
        kr = kr_all[:, ks]
        kp = kp_all[:, ks]
        vr = vr_all[:, vs]
        vp = vp_all[:, vs]

        a_real = (lax.dot_general(qr, kr, dn, preferred_element_type=jnp.float32)
                  - lax.dot_general(qp, kp, dn, preferred_element_type=jnp.float32))
        a_phase = (lax.dot_general(qr, kp, dn, preferred_element_type=jnp.float32)
                   + lax.dot_general(qp, kr, dn, preferred_element_type=jnp.float32))

        a_real = jnp.where(mask, neg, a_real)
        a_phase = jnp.where(mask, neg, a_phase)

        p_real = softmax(a_real)
        p_phase = softmax(a_phase)

        # continue_complex=False branch; dropout = identity (eval mode).
        # Head merge done in-kernel: write each head's slice of the lane-dense block.
        o_ref[0, 0, :, vs] = jnp.dot(p_real, vr, preferred_element_type=jnp.float32)
        o_ref[1, 0, :, vs] = jnp.dot(p_phase, vp, preferred_element_type=jnp.float32)
        attn_ref[h, 0] = p_real


def complex_attention(q_all, k_all, v_all, mask_i8, *, n_head, d_k, d_v, temperature):
    """q_all/k_all/v_all: (2, B, L, n_head*d); mask_i8: (B, Lq, Lk) int8."""
    _, B, Lq, ndk = q_all.shape
    Lk = k_all.shape[2]
    ndv = v_all.shape[3]

    kernel = functools.partial(
        _complex_attn_kernel, n_head=n_head, d_k=d_k, d_v=d_v,
        inv_temperature=float(1.0 / temperature))

    out_all, attn = pl.pallas_call(
        kernel,
        grid=(B,),
        in_specs=[
            pl.BlockSpec((2, 1, Lq, ndk), lambda b: (0, b, 0, 0)),
            pl.BlockSpec((2, 1, Lk, ndk), lambda b: (0, b, 0, 0)),
            pl.BlockSpec((2, 1, Lk, ndv), lambda b: (0, b, 0, 0)),
            pl.BlockSpec((1, Lq, Lk), lambda b: (b, 0, 0)),   # mask re-read, not tiled n_head x
        ],
        out_specs=(
            pl.BlockSpec((2, 1, Lq, ndv), lambda b: (0, b, 0, 0)),
            pl.BlockSpec((n_head, 1, Lq, Lk), lambda b: (0, b, 0, 0)),
        ),
        out_shape=(
            jax.ShapeDtypeStruct((2, B, Lq, ndv), jnp.float32),
            jax.ShapeDtypeStruct((n_head, B, Lq, Lk), jnp.float32),
        ),
        compiler_params=pltpu.CompilerParams(dimension_semantics=("parallel",)),
    )(q_all, k_all, v_all, mask_i8)
    return out_all, attn


def _fc_ln_kernel(x_ref, res_ref, w_ref, b_ref, g_ref, beta_ref, o_ref):
    # fc -> (dropout = identity in eval) -> residual add -> LayerNorm(d_model)
    y = jnp.dot(x_ref[...], w_ref[...], preferred_element_type=jnp.float32) + b_ref[...]
    z = y + res_ref[...]
    mu = jnp.mean(z, axis=-1, keepdims=True)
    var = jnp.mean(jnp.square(z - mu), axis=-1, keepdims=True)
    o_ref[...] = (z - mu) * lax.rsqrt(var + 1e-5) * g_ref[...] + beta_ref[...]


def fc_residual_layernorm_tiled(x2d, res2d, w_fc_t, b_fc, gamma, beta):
    """x2d: (M, n_head*d_v), res2d: (M, d_model), w_fc_t: (n_head*d_v, d_model)."""
    M, K = x2d.shape
    d_model = res2d.shape[1]
    tm = _row_tile(M)
    return pl.pallas_call(
        _fc_ln_kernel,
        grid=(M // tm,),
        in_specs=[
            pl.BlockSpec((tm, K), lambda i: (i, 0)),
            pl.BlockSpec((tm, d_model), lambda i: (i, 0)),
            pl.BlockSpec((K, d_model), lambda i: (0, 0)),
            pl.BlockSpec((1, d_model), lambda i: (0, 0)),
            pl.BlockSpec((1, d_model), lambda i: (0, 0)),
            pl.BlockSpec((1, d_model), lambda i: (0, 0)),
        ],
        out_specs=pl.BlockSpec((tm, d_model), lambda i: (i, 0)),
        out_shape=jax.ShapeDtypeStruct((M, d_model), jnp.float32),
        compiler_params=pltpu.CompilerParams(dimension_semantics=("parallel",)),
    )(x2d, res2d, w_fc_t, b_fc.reshape(1, d_model),
      gamma.reshape(1, d_model), beta.reshape(1, d_model))


# ----------------------------- Module forward ------------------------------ #

def multi_head_attention_forward(params, q_real, k_real, v_real,
                                 q_phase, k_phase, v_phase, mask):
    n_head, d_k, d_v = params["n_head"], params["d_k"], params["d_v"]
    B, Lq, d_model = q_real.shape
    Lk = k_real.shape[1]
    Lv = v_real.shape[1]

    # Pre-transpose weights once (PyTorch (out, in) -> (in, out)); tiny one-off op.
    w_qs_t = params["w_qs"].T
    w_ks_t = params["w_ks"].T
    w_vs_t = params["w_vs"].T
    w_fc_t = params["w_fc"].T

    # Stack real & phase along rows so each projection weight is applied once.
    xq = jnp.concatenate([q_real, q_phase], axis=0).reshape(2 * B * Lq, d_model)
    xk = jnp.concatenate([k_real, k_phase], axis=0).reshape(2 * B * Lk, d_model)
    xv = jnp.concatenate([v_real, v_phase], axis=0).reshape(2 * B * Lv, d_model)

    q_all = linear_tiled(xq, w_qs_t, params["b_qs"]).reshape(2, B, Lq, n_head * d_k)
    k_all = linear_tiled(xk, w_ks_t, params["b_ks"]).reshape(2, B, Lk, n_head * d_k)
    v_all = linear_tiled(xv, w_vs_t, params["b_vs"]).reshape(2, B, Lv, n_head * d_v)

    # Original (B, Lq, Lk) mask, int8 — broadcast over heads inside the kernel.
    mask_i8 = mask.astype(jnp.int8)
    temperature = float(np.power(d_k * 2, 0.5))

    out_all, attn = complex_attention(
        q_all, k_all, v_all, mask_i8,
        n_head=n_head, d_k=d_k, d_v=d_v, temperature=temperature)
    # attn: (n_head, B, Lq, Lk) -> (n_head*B, Lq, Lk), same ordering as the
    # reference's permute(2,0,1,3).view(-1, ...) batching (index = h*B + b).
    attn = attn.reshape(n_head * B, Lq, Lk)

    # Fused fc -> residual -> LayerNorm for real & phase in ONE call (shared weights).
    residual_all = jnp.concatenate([q_real, q_phase], axis=0).reshape(2 * B * Lq, d_model)
    y = fc_residual_layernorm_tiled(
        out_all.reshape(2 * B * Lq, n_head * d_v), residual_all,
        w_fc_t, params["b_fc"], params["ln_gamma"], params["ln_beta"])
    y = y.reshape(2, B, Lq, d_model)
    out_real, out_phase = y[0], y[1]

    return out_real, out_phase, attn


def init_params(key, n_head, d_model, d_k, d_v):
    ks = jax.random.split(key, 8)
    std_qk = np.sqrt(2.0 / (d_model + d_k))
    std_v = np.sqrt(2.0 / (d_model + d_v))
    std_fc = np.sqrt(2.0 / (n_head * d_v + d_model))   # xavier_normal_
    bbound = 1.0 / np.sqrt(d_model)
    return {
        "n_head": n_head, "d_k": d_k, "d_v": d_v,
        "w_qs": std_qk * jax.random.normal(ks[0], (n_head * d_k, d_model), jnp.float32),
        "b_qs": jax.random.uniform(ks[1], (n_head * d_k,), jnp.float32, -bbound, bbound),
        "w_ks": std_qk * jax.random.normal(ks[2], (n_head * d_k, d_model), jnp.float32),
        "b_ks": jax.random.uniform(ks[3], (n_head * d_k,), jnp.float32, -bbound, bbound),
        "w_vs": std_v * jax.random.normal(ks[4], (n_head * d_v, d_model), jnp.float32),
        "b_vs": jax.random.uniform(ks[5], (n_head * d_v,), jnp.float32, -bbound, bbound),
        "w_fc": std_fc * jax.random.normal(ks[6], (d_model, n_head * d_v), jnp.float32),
        "b_fc": jax.random.uniform(ks[7], (d_model,), jnp.float32, -bbound, bbound),
        "ln_gamma": jnp.ones((d_model,), jnp.float32),
        "ln_beta": jnp.zeros((d_model,), jnp.float32),
    }


if __name__ == "__main__":
    n_head, d_model, d_k, d_v = 4, 32, 8, 8
    B, L = 2, 8

    key = jax.random.PRNGKey(0)
    kp, kx = jax.random.split(key)
    params = init_params(kp, n_head, d_model, d_k, d_v)

    xs = jax.random.normal(kx, (6, B, L, d_model), jnp.float32)
    q_real, k_real, v_real, q_phase, k_phase, v_phase = [xs[i] for i in range(6)]

    # Boolean attention mask (True -> masked); mask out the last key position.
    mask = jnp.zeros((B, L, L), jnp.bool_).at[:, :, -1].set(True)

    out_real, out_phase, attn = multi_head_attention_forward(
        params, q_real, k_real, v_real, q_phase, k_phase, v_phase, mask)
    jax.block_until_ready((out_real, out_phase, attn))

    assert out_real.shape == (B, L, d_model)
    assert out_phase.shape == (B, L, d_model)
    assert attn.shape == (n_head * B, L, L)
    assert bool(jnp.all(jnp.isfinite(out_real))) and bool(jnp.all(jnp.isfinite(out_phase)))
    # softmax rows should sum to ~1 (approx reciprocal => loose tolerance)
    assert bool(jnp.allclose(jnp.sum(attn, axis=-1), 1.0, atol=1e-2))
    print("KERNEL_OK")
</pallas_src>

<mosaic_0001>
module attributes {stable_mosaic.version = 11 : i64} {
  func.func @_linear_kernel(%arg0: i32, %arg1: memref<32x32xf32, #tpu.memory_space<vmem>>, %arg2: memref<32x32xf32, #tpu.memory_space<vmem>>, %arg3: memref<1x32xf32, #tpu.memory_space<vmem>>, %arg4: memref<32x32xf32, #tpu.memory_space<vmem>>) attributes {dimension_semantics = [#tpu.dimension_semantics<parallel>], iteration_bounds = array<i64: 1>, scalar_prefetch = 0 : i64, scratch_operands = 0 : i64, tpu.core_type = #tpu.core_type<tc>, window_params = [{transform_indices = @transform_0, window_bounds = array<i64: 32, 32>}, {pipeline_mode = #tpu.pipeline_mode<synchronous>, transform_indices = @transform_1, window_bounds = array<i64: 32, 32>}, {pipeline_mode = #tpu.pipeline_mode<synchronous>, transform_indices = @transform_2, window_bounds = array<i64: 1, 32>}, {transform_indices = @transform_3, window_bounds = array<i64: 32, 32>}]} {
    %c0 = arith.constant 0 : index
    %c0_0 = arith.constant 0 : index
    %0 = vector.load %arg1[%c0, %c0_0] : memref<32x32xf32, #tpu.memory_space<vmem>>, vector<32x32xf32>
    %c0_1 = arith.constant 0 : index
    %c0_2 = arith.constant 0 : index
    %1 = vector.load %arg2[%c0_1, %c0_2] : memref<32x32xf32, #tpu.memory_space<vmem>>, vector<32x32xf32>
    %cst = arith.constant dense<0.000000e+00> : vector<32x32xf32>
    %2 = tpu.matmul %0, %1, %cst {dimension_numbers = #tpu.dot_dimension_numbers<[1], [0], [0], [1], [0, 0, 1, 1], [], []>} : vector<32x32xf32>, vector<32x32xf32>, vector<32x32xf32> -> vector<32x32xf32>
    %c0_3 = arith.constant 0 : index
    %c0_4 = arith.constant 0 : index
    %3 = vector.load %arg3[%c0_3, %c0_4] : memref<1x32xf32, #tpu.memory_space<vmem>>, vector<1x32xf32>
    %4 = vector.broadcast %3 : vector<1x32xf32> to vector<32x32xf32>
    %5 = arith.addf %2, %4 : vector<32x32xf32>
    %c0_5 = arith.constant 0 : index
    %c0_6 = arith.constant 0 : index
    %6 = vector.load %arg4[%c0_5, %c0_6] : memref<32x32xf32, #tpu.memory_space<vmem>>, vector<32x32xf32>
    tpu.vector_store %arg4[%c0_5, %c0_6], %5 {strides = array<i32>} : memref<32x32xf32, #tpu.memory_space<vmem>>, vector<32x32xf32>,
    return
  }
  func.func @transform_0(%arg0: i32) -> (i32, i32) {
    %c0_i32 = arith.constant 0 : i32
    %c0_i32_0 = arith.constant 0 : i32
    return %arg0, %c0_i32 : i32, i32
  }
  func.func @transform_1(%arg0: i32) -> (i32, i32) {
    %c0_i32 = arith.constant 0 : i32
    %c0_i32_0 = arith.constant 0 : i32
    %c0_i32_1 = arith.constant 0 : i32
    return %c0_i32, %c0_i32_0 : i32, i32
  }
  func.func @transform_2(%arg0: i32) -> (i32, i32) {
    %c0_i32 = arith.constant 0 : i32
    %c0_i32_0 = arith.constant 0 : i32
    %c0_i32_1 = arith.constant 0 : i32
    return %c0_i32, %c0_i32_0 : i32, i32
  }
  func.func @transform_3(%arg0: i32) -> (i32, i32) {
    %c0_i32 = arith.constant 0 : i32
    %c0_i32_0 = arith.constant 0 : i32
    return %arg0, %c0_i32 : i32, i32
  }
}

</mosaic_0001>

<bundles_post_ra>
// kernel: tpu_custom_call.1
= control target key start
LH: loop header
LB: loop body
LE: loop exit
PB: predicated region body
PF: predicated region fallthrough
CT: control target
= control target key end

     0   :  { %8 = vsyncpa [#allocation3], 0  ;;  %s375_s0 = inlined_call_operand.hbm [shape: f32[32,32], index: 0, kind: input, shape index: {}]   ;;  %s376_s1 = inlined_call_operand.hbm [shape: f32[32,32], index: 1, kind: input, shape index: {}]   ;;  %s377_s2 = inlined_call_operand.vmem [shape: f32[1,32], index: 2, kind: input, shape index: {}]   ;;  %s378_s3 = inlined_call_operand.hbm [shape: f32[32,32], index: 3, kind: output, shape index: {}]  }
   0x1   :  { %9 = vsyncpa [#allocation6], 0 }
   0x2   :  { %10 = vsyncpa [#allocation4], 0  ;;  %s294_s12 = smov [#allocation2]   ;;  %s222_s16 = scalar_lea.hbm %s375_s0, 512 }
   0x3   :  { %s16_s13 = sshll.u32 %s294_s12, 4  ;;  %p223_p0 = scmp.ne.s32.totalorder %s375_s0, %s222_s16  ;;  %s17_s13 = int_to_ptr.vmem [resolvable:$true] %s16_s13 }
   0x4   :  { %p226_p1 = scmp.lt.u32.totalorder %s222_s16, %s375_s0 }
   0x6   :  { %p228_p2 = pnand %p226_p1, %p223_p0 }
   0x8   :  { %231 = shalt.err (!%p228_p2)
}
   0x9   :  { %s232_s21 = scalar_lea.vmem %s17_s13, 512  ;;  %p237_p4 = scmp.lt.s32.totalorder %s17_s13, %s17_s13 }
   0xa   :  { %p233_p3 = scmp.ne.s32.totalorder %s17_s13, %s232_s21  ;;  %p238_p5 = scmp.lt.s32.totalorder %s232_s21, %s232_s21 }
   0xc   :  { %p239_p6 = por %p238_p5, %p237_p4 }
   0xe   :  { %p240_p7 = pnand %p239_p6, %p233_p3 }
  0x10   :  { %243 = shalt.err (!%p240_p7)
}
  0x11   :  { %s295_s22 = smov 128   ;;  %s296_s23 = smov 8  }
  0x12   :  { %22 = dma.hbm_to_vmem [thread:$0]  %s375_s0, 512, %s17_s13, [#allocation3], %s295_s22, %s295_s22, %s296_s23  }
  0x13   :  { %s297_s26 = smov [#allocation5]   ;;  %s244_s30 = scalar_lea.hbm %s376_s1, 512 }
  0x14   :  { %s28_s27 = sshll.u32 %s297_s26, 4  ;;  %p245_p8 = scmp.ne.s32.totalorder %s376_s1, %s244_s30  ;;  %s29_s27 = int_to_ptr.vmem [resolvable:$true] %s28_s27 }
  0x15   :  { %p248_p9 = scmp.lt.u32.totalorder %s244_s30, %s376_s1 }
  0x17   :  { %p250_p10 = pnand %p248_p9, %p245_p8 }
  0x19   :  { %253 = shalt.err (!%p250_p10)
}
  0x1a   :  { %s254_s8 = scalar_lea.vmem %s29_s27, 512  ;;  %p259_p12 = scmp.lt.s32.totalorder %s29_s27, %s29_s27 }
  0x1b   :  { %p255_p11 = scmp.ne.s32.totalorder %s29_s27, %s254_s8  ;;  %p260_p13 = scmp.lt.s32.totalorder %s254_s8, %s254_s8 }
  0x1d   :  { %p261_p0 = por %p260_p13, %p259_p12 }
  0x1f   :  { %p262_p1 = pnand %p261_p0, %p255_p11 }
  0x21   :  { %265 = shalt.err (!%p262_p1)
}
  0x22   :  { %34 = dma.hbm_to_vmem [thread:$0]  %s376_s1, 512, %s29_s27, [#allocation6], %s295_s22, %s295_s22, %s296_s23  }
  0x23   :  { %288 = dma.done.wait [#allocation3], 512  }
  0x24   :  { %289 = vsyncadd [#allocation3], 4294966784 }
  0x25   :  { %290 = dma.done.wait [#allocation6], 512  }
  0x26   :  { %291 = vsyncadd [#allocation6], 4294966784  ;;  %vm58_vm0 = vcmask 261120   ;;  %v47_v0 = vld [vmem:[#allocation5] sm:$0xff]  ;;  %v48_v1 = vld [vmem:[#allocation5 + $0x8] sm:$0xff]  ;;  %s298_s11 = smov [#allocation7]  }
  0x27   :  { %v49_v2 = vld [vmem:[#allocation5 + $0x10] sm:$0xff]  ;;  %v205_v3 = vpack.c.bf16 %v48_v1, %v47_v0  ;;  %v50_v4 = vld [vmem:[#allocation5 + $0x18] sm:$0xff]  ;;  %v43_v5 = vld [vmem:[#allocation2] sm:$0xff]  ;;  %s165_s12 = sshll.u32 %s298_s11, 4  ;;  %s166_s12 = int_to_ptr.vmem [resolvable:$true] %s165_s12 }
  0x28   :  { %v45_v6 = vld [vmem:[#allocation2 + $0x10] sm:$0xff]  ;;  %v209_v7 = vpack.c.bf16 %v50_v4, %v49_v2  ;;  %199 = vmatprep.mubr.msk.f32.mxu0 %vm58_vm0, %v43_v5  ;;  %v44_v8 = vld [vmem:[#allocation2 + $0x8] sm:$0xff]  ;;  %v46_v9 = vld [vmem:[#allocation2 + $0x18] sm:$0xff]  ;;  %p271_p3 = scmp.lt.s32.totalorder %s166_s12, %s166_s12 }
  0x29   :  { %202 = vmatprep.mubr.msk.f32.mxu1 %vm58_vm0, %v45_v6  ;;  %206 = vmatprep.subr.bf16.mxu0 %v205_v3  ;;  %v178_v10 = vld [vmem:[%s377_s2] ss:$0 sm:$0xff]  ;;  %s266_s2 = scalar_lea.vmem %s166_s12, 512 }
  0x2a   :  { %213 = vmatprep.subr.bf16.mxu1 %v205_v3  ;;  %208 = vmatpush3.bf16.msra.mxu0 %v205_v3  ;;  %p267_p2 = scmp.ne.s32.totalorder %s166_s12, %s266_s2  ;;  %p272_p4 = scmp.lt.s32.totalorder %s266_s2, %s266_s2 }
  0x2b   :  { %215 = vmatpush3.bf16.msra.mxu1 %v205_v3  ;;  %210 = vmatprep.subr.bf16.mxu0 %v209_v7 }
  0x2c   :  { %214 = vmatprep.subr.bf16.mxu1 %v209_v7  ;;  %p273_p5 = por %p272_p4, %p271_p3 }
  0x2e   :  { %212 = vmatpush3.bf16.msra.mxu0 %v209_v7  ;;  %p274_p6 = pnand %p273_p5, %p267_p2 }
  0x2f   :  { %216 = vmatpush3.bf16.msra.mxu1 %v209_v7 }
  0x31   :  { %200 = vmatmul.mubr.msk.f32.vlgmr.msra.gmra.mrb[0].mxu0 %vm58_vm0, %v44_v8 }
  0x32   :  { %203 = vmatmul.mubr.msk.f32.vlgmr.msra.gmra.mrb[0].mxu1 %vm58_vm0, %v46_v9 }
 0x104   :  { %v201_v11 = vpop.f32.mrb[0].mxu0 }
 0x105   :  { %v204_v12 = vpop.f32.mrb[0].mxu1  ;;  %v143_v13 = vadd.f32 %v201_v11, %v178_v10  ;;  %v137_v15 = vpop.f32.mrb[1].mxu0 }
 0x106   :  { %v153_v14 = vadd.f32 %v204_v12, %v178_v10  ;;  %v147_v16 = vpop.f32.mrb[1].mxu1  ;;  %v138_v17 = vadd.f32 %v178_v10, %v137_v15 }
 0x107   :  { %v148_v18 = vadd.f32 %v178_v10, %v147_v16  ;;  %157 = vst.msk [vmem:[#allocation7 + $0x8] sm:$0xff] %vm58_vm0, %v143_v13 }
 0x108   :  { %159 = vst.msk [vmem:[#allocation7 + $0x18] sm:$0xff] %vm58_vm0, %v153_v14  ;;  %156 = vst.msk [vmem:[#allocation7] sm:$0xff] %vm58_vm0, %v138_v17 }
 0x109   :  { %158 = vst.msk [vmem:[#allocation7 + $0x10] sm:$0xff] %vm58_vm0, %v148_v18 }
 0x10a   :  { %277 = shalt.err (!%p274_p6)
}
 0x10b   :  { %s278_s15 = scalar_lea.hbm %s378_s3, 512 }
 0x10c   :  { %p279_p7 = scmp.ne.s32.totalorder %s378_s3, %s278_s15  ;;  %p282_p8 = scmp.lt.u32.totalorder %s278_s15, %s378_s3 }
 0x10e   :  { %p284_p9 = pnand %p282_p8, %p279_p7 }
 0x110   :  { %287 = shalt.err (!%p284_p9)
}
 0x111   :  { %171 = dma.vmem_to_hbm [thread:$0]  %s166_s12, 512, %s378_s3, [#allocation4], %s295_s22, %s295_s22, %s296_s23  }
 0x112   :  { %292 = dma.done.wait [#allocation4], 512  }
 0x113   :  { %293 = vsyncadd [#allocation4], 4294966784 }
 0x114   :  { %175 = vsyncpa [#allocation3], 1 }
 0x115   :  { %176 = vsyncpa [#allocation6], 1 }
 0x116   :  { %177 = vsyncpa [#allocation4], 1 }

</bundles_post_ra>
